<compile_context>
chip_gen: v6e
topology: v6e:2x2x1
jax: 0.10.0
libtpu: 0.0.40
codegen_flags: <defaults>
</compile_context>

<pallas_src>
import jax
import jax.numpy as jnp
from jax.experimental import pallas as pl
from jax.experimental.pallas import tpu as pltpu


# --------------------------------------------------------------------------
# helpers
# --------------------------------------------------------------------------

_TV_CANDIDATES = (8192, 4096, 2048, 1024, 512, 256, 128)


def _round_up(x, m):
    return (x + m - 1) // m * m


def _vmem_config():
    """(vmem_limit_bytes, tile_budget_bytes) chosen from the TPU generation."""
    cap = 64 * 1024 * 1024
    try:
        cap = int(getattr(pltpu.get_tpu_info(), "vmem_capacity_bytes", cap))
    except Exception:
        pass
    if cap >= 100 * 1024 * 1024:          # v5e / v6e: 128 MiB physical VMEM
        return 96 * 1024 * 1024, 64 * 1024 * 1024
    return 48 * 1024 * 1024, 26 * 1024 * 1024   # v7x: 64 MiB physical


def _decoder_vmem(tm, tv, H_pad, ct, so):
    # double-buffered t / dec_W / bias / out tiles
    return 2 * (tm * H_pad * ct + H_pad * tv * ct + tv * 4 + tm * tv * so)


def _transform_vmem(tm_x, H, H_pad, ct, sx):
    io = tm_x * H * sx + H * H_pad * ct + 3 * H_pad * 4 + tm_x * H_pad * ct
    interm = 4 * tm_x * H_pad * 4        # f32 intermediate + temporaries (rough)
    return 2 * io + interm


def _select_tiles(M, V, H, H_pad, ct, so, sx, budget, tm=None, tv=None):
    # decoder row tile: single row tile for modest M (t stays resident while
    # the vocab axis streams), else 512-row tiles.
    if tm is None:
        tm = _round_up(M, 8) if M <= 1024 else 512
        while tm > 8 and _decoder_vmem(tm, 128, H_pad, ct, so) > budget:
            tm = max(8, _round_up(tm // 2, 8))
    # vocab tile: largest candidate that fits the budget and is not absurdly
    # larger than the (128-rounded) vocab.
    if tv is None:
        tv_cap = _round_up(V, 128)
        tv = 128
        for cand in _TV_CANDIDATES:
            if cand <= tv_cap and _decoder_vmem(tm, cand, H_pad, ct, so) <= budget:
                tv = cand
                break
    # transform row tile: decoupled (smaller) and >= 2 grid steps for small M
    # so the single "parallel" rows axis splits across both v7x TensorCores.
    tm_x = min(tm, 256)
    if pl.cdiv(M, tm_x) < 2 and M > 8:
        tm_x = max(8, _round_up(pl.cdiv(M, 2), 8))
    while tm_x > 8 and _transform_vmem(tm_x, H, H_pad, ct, sx) > budget:
        tm_x = max(8, _round_up(tm_x // 2, 8))
    return tm, tv, tm_x


# --------------------------------------------------------------------------
# one-time parameter preparation (hoisted out of the hot path)
# --------------------------------------------------------------------------

def prepare_mlm_head_params(dense_w, dense_b, ln_g, ln_b, dec_w, dec_b,
                            *, compute_dtype=jnp.bfloat16):
    """Cast + pad the HeadForMLM parameters once, at model init.

    The hidden dim is padded to a multiple of 128 (zero columns/rows), so the
    decoder GEMM's K dim fills MXU lanes even for tiny H.  Padded columns of
    dense_W / dense_b / gamma / beta are zero, so the transform's padded
    output columns are exactly zero and the decoder result is unchanged.
    """
    cd = jnp.dtype(compute_dtype)
    H = dense_w.shape[0]
    V = dec_w.shape[1]
    H_pad = _round_up(H, 128)
    pad_h = H_pad - H
    dense_w_p = jnp.pad(dense_w.astype(cd), ((0, 0), (0, pad_h)))
    dense_b_p = jnp.pad(dense_b.astype(jnp.float32), (0, pad_h)).reshape(1, H_pad)
    ln_g_p = jnp.pad(ln_g.astype(jnp.float32), (0, pad_h)).reshape(1, H_pad)
    ln_b_p = jnp.pad(ln_b.astype(jnp.float32), (0, pad_h)).reshape(1, H_pad)
    dec_w_p = jnp.pad(dec_w.astype(cd), ((0, pad_h), (0, 0)))
    dec_b_p = dec_b.astype(jnp.float32).reshape(1, V)
    return {
        "dense_w": dense_w_p,   # (H, H_pad)   compute dtype
        "dense_b": dense_b_p,   # (1, H_pad)   f32
        "ln_g": ln_g_p,         # (1, H_pad)   f32
        "ln_b": ln_b_p,         # (1, H_pad)   f32
        "dec_w": dec_w_p,       # (H_pad, V)   compute dtype
        "dec_b": dec_b_p,       # (1, V)       f32
    }


# --------------------------------------------------------------------------
# kernels
# --------------------------------------------------------------------------

def _make_transform_kernel(H, H_pad, eps, compute_dtype):
    inv_sqrt2 = 0.7071067811865476
    inv_h = 1.0 / H

    def kernel(x_ref, dw_ref, db_ref, g_ref, b_ref, t_ref):
        # downcast in VMEM (no wrapper-side HBM round trip); bf16 x bf16 MXU dot
        xb = x_ref[...].astype(compute_dtype)
        h = jnp.dot(xb, dw_ref[...],
                    preferred_element_type=jnp.float32) + db_ref[...]
        # exact GELU (erf form), matching torch.nn.GELU() default
        h = 0.5 * h * (1.0 + jax.lax.erf(h * inv_sqrt2))
        # LayerNorm over the TRUE hidden axis.  Padded columns of h are exactly
        # zero (dense_W / dense_b pads are zero, gelu(0)=0), so sum/H == mean.
        mean = jnp.sum(h, axis=-1, keepdims=True) * inv_h
        d = h - mean
        if H_pad != H:
            col = jax.lax.broadcasted_iota(jnp.int32, d.shape, 1)
            d = jnp.where(col < H, d, 0.0)
        var = jnp.sum(d * d, axis=-1, keepdims=True) * inv_h
        out = d * jax.lax.rsqrt(var + eps) * g_ref[...] + b_ref[...]
        t_ref[...] = out.astype(t_ref.dtype)

    return kernel


def _decoder_kernel(t_ref, w_ref, b_ref, o_ref):
    acc = jnp.dot(t_ref[...], w_ref[...], preferred_element_type=jnp.float32)
    o_ref[...] = (acc + b_ref[...]).astype(o_ref.dtype)


# --------------------------------------------------------------------------
# forward wrapper (hot path)
# --------------------------------------------------------------------------

def mlm_head(hidden_states, params, *, eps=1e-5, logits_dtype=None,
             tm=None, tv=None):
    """HeadForMLM forward.  `params` comes from prepare_mlm_head_params."""
    dense_w = params["dense_w"]
    dec_w = params["dec_w"]
    H, H_pad = dense_w.shape
    V = dec_w.shape[1]
    compute_dtype = dec_w.dtype

    B, S, H_in = hidden_states.shape
    assert H_in == H, (H_in, H)
    M = B * S
    logits_dtype = (hidden_states.dtype if logits_dtype is None
                    else jnp.dtype(logits_dtype))

    ct = jnp.dtype(compute_dtype).itemsize
    so = jnp.dtype(logits_dtype).itemsize
    sx = jnp.dtype(hidden_states.dtype).itemsize
    vmem_limit, budget = _vmem_config()
    tm, tv, tm_x = _select_tiles(M, V, H, H_pad, ct, so, sx, budget, tm, tv)

    # metadata-only reshape; no dtype cast, no padding, no extra HBM traffic
    x = hidden_states.reshape(M, H)

    # ---- kernel 1: dense -> GELU -> LayerNorm (row-tiled) ------------------
    t = pl.pallas_call(
        _make_transform_kernel(H, H_pad, eps, compute_dtype),
        out_shape=jax.ShapeDtypeStruct((M, H_pad), compute_dtype),
        grid_spec=pltpu.PrefetchScalarGridSpec(
            num_scalar_prefetch=0,
            grid=(pl.cdiv(M, tm_x),),
            in_specs=[
                pl.BlockSpec((tm_x, H), lambda i: (i, 0)),     # x rows (native dtype)
                pl.BlockSpec((H, H_pad), lambda i: (0, 0)),    # dense W (resident)
                pl.BlockSpec((1, H_pad), lambda i: (0, 0)),    # dense b
                pl.BlockSpec((1, H_pad), lambda i: (0, 0)),    # LN gamma
                pl.BlockSpec((1, H_pad), lambda i: (0, 0)),    # LN beta
            ],
            out_specs=pl.BlockSpec((tm_x, H_pad), lambda i: (i, 0)),
        ),
        compiler_params=pltpu.CompilerParams(
            dimension_semantics=("parallel",),
            vmem_limit_bytes=vmem_limit),
    )(x, dense_w, params["dense_b"], params["ln_g"], params["ln_b"])

    # ---- kernel 2: decoder GEMM (vocab-outer, uniform steps) ---------------
    # dec_W / dec_b block indices only change with the outer vocab index, so
    # the big weight stream hits HBM exactly once; only the small (tm, H_pad)
    # t tile re-streams.  Both axes "parallel" => megacore-shardable.
    out = pl.pallas_call(
        _decoder_kernel,
        out_shape=jax.ShapeDtypeStruct((M, V), logits_dtype),
        grid_spec=pltpu.PrefetchScalarGridSpec(
            num_scalar_prefetch=0,
            grid=(pl.cdiv(V, tv), pl.cdiv(M, tm)),
            in_specs=[
                pl.BlockSpec((tm, H_pad), lambda j, i: (i, 0)),   # t rows
                pl.BlockSpec((H_pad, tv), lambda j, i: (0, j)),   # decoder W slab
                pl.BlockSpec((1, tv), lambda j, i: (0, j)),       # decoder bias slab
            ],
            out_specs=pl.BlockSpec((tm, tv), lambda j, i: (i, j)),
        ),
        compiler_params=pltpu.CompilerParams(
            dimension_semantics=("parallel", "parallel"),
            vmem_limit_bytes=vmem_limit),
    )(t, dec_w, params["dec_b"])

    return out.reshape(B, S, V)


# --------------------------------------------------------------------------
# pure-JAX reference
# --------------------------------------------------------------------------

def reference(hidden_states, dense_w, dense_b, ln_g, ln_b, dec_w, dec_b,
              eps=1e-5):
    h = hidden_states.astype(jnp.float32) @ dense_w + dense_b
    h = 0.5 * h * (1.0 + jax.lax.erf(h / jnp.sqrt(2.0)))
    mean = jnp.mean(h, axis=-1, keepdims=True)
    var = jnp.mean((h - mean) ** 2, axis=-1, keepdims=True)
    h = (h - mean) * jax.lax.rsqrt(var + eps) * ln_g + ln_b
    return h @ dec_w + dec_b


if __name__ == "__main__":
    # Small config consistent with the module: hidden_size=32, vocab_size=256
    B, S, H, V = 2, 8, 32, 256
    eps = 1e-5

    key = jax.random.PRNGKey(0)
    k_x, k_dw, k_db, k_g, k_b, k_decw = jax.random.split(key, 6)

    hidden_states = jax.random.normal(k_x, (B, S, H), dtype=jnp.float32)

    # Deterministic synthetic parameters (shapes follow HeadForMLM.__init__)
    dense_w = jax.random.normal(k_dw, (H, H), dtype=jnp.float32) * 0.05
    dense_b = jax.random.normal(k_db, (H,), dtype=jnp.float32) * 0.02
    ln_g = 1.0 + 0.1 * jax.random.normal(k_g, (H,), dtype=jnp.float32)
    ln_b = 0.1 * jax.random.normal(k_b, (H,), dtype=jnp.float32)
    dec_w = jax.random.normal(k_decw, (H, V), dtype=jnp.float32) * 0.05
    dec_b = jnp.zeros((V,), dtype=jnp.float32)   # self.bias init = zeros

    ref = reference(hidden_states, dense_w, dense_b, ln_g, ln_b,
                    dec_w, dec_b, eps=eps)

    # Exact-parity path: f32 compute dtype end to end
    params_f32 = prepare_mlm_head_params(dense_w, dense_b, ln_g, ln_b,
                                         dec_w, dec_b,
                                         compute_dtype=jnp.float32)
    out_f32 = jax.block_until_ready(mlm_head(hidden_states, params_f32, eps=eps))
    assert out_f32.shape == (B, S, V)
    assert jnp.allclose(out_f32, ref, atol=1e-4, rtol=1e-4), \
        float(jnp.max(jnp.abs(out_f32 - ref)))

    # Default fast path: bf16 operands, f32 accumulation (approximate by design)
    params_bf16 = prepare_mlm_head_params(dense_w, dense_b, ln_g, ln_b,
                                          dec_w, dec_b,
                                          compute_dtype=jnp.bfloat16)
    out_fast = jax.block_until_ready(mlm_head(hidden_states, params_bf16, eps=eps))
    assert out_fast.shape == (B, S, V)
    assert jnp.allclose(out_fast, ref, atol=1e-1, rtol=1e-1), \
        float(jnp.max(jnp.abs(out_fast - ref)))

    # bf16 logits option (halves the decoder output stream)
    out_bf16_logits = jax.block_until_ready(
        mlm_head(hidden_states, params_bf16, eps=eps, logits_dtype=jnp.bfloat16))
    assert out_bf16_logits.shape == (B, S, V)
    assert out_bf16_logits.dtype == jnp.bfloat16
    assert jnp.allclose(out_bf16_logits.astype(jnp.float32), ref,
                        atol=1e-1, rtol=1e-1)

    print("KERNEL_OK")
</pallas_src>

<mosaic_0001>
module attributes {stable_mosaic.version = 11 : i64} {
  func.func @kernel(%arg0: i32, %arg1: memref<8x32xf32, #tpu.memory_space<vmem>>, %arg2: memref<32x128xf32, #tpu.memory_space<vmem>>, %arg3: memref<1x128xf32, #tpu.memory_space<vmem>>, %arg4: memref<1x128xf32, #tpu.memory_space<vmem>>, %arg5: memref<1x128xf32, #tpu.memory_space<vmem>>, %arg6: memref<8x128xf32, #tpu.memory_space<vmem>>) attributes {dimension_semantics = [#tpu.dimension_semantics<parallel>], iteration_bounds = array<i64: 2>, scalar_prefetch = 0 : i64, scratch_operands = 0 : i64, tpu.core_type = #tpu.core_type<tc>, window_params = [{transform_indices = @transform_0, window_bounds = array<i64: 8, 32>}, {pipeline_mode = #tpu.pipeline_mode<synchronous>, transform_indices = @transform_1, window_bounds = array<i64: 32, 128>}, {pipeline_mode = #tpu.pipeline_mode<synchronous>, transform_indices = @transform_2, window_bounds = array<i64: 1, 128>}, {pipeline_mode = #tpu.pipeline_mode<synchronous>, transform_indices = @transform_3, window_bounds = array<i64: 1, 128>}, {pipeline_mode = #tpu.pipeline_mode<synchronous>, transform_indices = @transform_4, window_bounds = array<i64: 1, 128>}, {transform_indices = @transform_5, window_bounds = array<i64: 8, 128>}]} {
    %c0 = arith.constant 0 : index
    %c0_0 = arith.constant 0 : index
    %0 = vector.load %arg1[%c0, %c0_0] : memref<8x32xf32, #tpu.memory_space<vmem>>, vector<8x32xf32>
    %c0_1 = arith.constant 0 : index
    %c0_2 = arith.constant 0 : index
    %1 = vector.load %arg2[%c0_1, %c0_2] : memref<32x128xf32, #tpu.memory_space<vmem>>, vector<32x128xf32>
    %cst = arith.constant dense<0.000000e+00> : vector<8x128xf32>
    %2 = tpu.matmul %0, %1, %cst {dimension_numbers = #tpu.dot_dimension_numbers<[1], [0], [0], [1], [0, 0, 1, 1], [], []>} : vector<8x32xf32>, vector<32x128xf32>, vector<8x128xf32> -> vector<8x128xf32>
    %c0_3 = arith.constant 0 : index
    %c0_4 = arith.constant 0 : index
    %3 = vector.load %arg3[%c0_3, %c0_4] : memref<1x128xf32, #tpu.memory_space<vmem>>, vector<1x128xf32>
    %4 = vector.broadcast %3 : vector<1x128xf32> to vector<8x128xf32>
    %5 = arith.addf %2, %4 : vector<8x128xf32>
    %cst_5 = arith.constant 5.000000e-01 : f32
    %6 = vector.broadcast %cst_5 : f32 to vector<8x128xf32>
    %7 = arith.mulf %6, %5 : vector<8x128xf32>
    %cst_6 = arith.constant 0.707106769 : f32
    %8 = vector.broadcast %cst_6 : f32 to vector<8x128xf32>
    %9 = arith.mulf %5, %8 : vector<8x128xf32>
    %10 = math.erf %9 : vector<8x128xf32>
    %cst_7 = arith.constant 1.000000e+00 : f32
    %11 = vector.broadcast %cst_7 : f32 to vector<8x128xf32>
    %12 = arith.addf %11, %10 : vector<8x128xf32>
    %13 = arith.mulf %7, %12 : vector<8x128xf32>
    %cst_8 = arith.constant dense<0.000000e+00> : vector<8xf32>
    %14 = vector.multi_reduction <add>, %13, %cst_8 [1] : vector<8x128xf32> to vector<8xf32>
    %15 = vector.shape_cast %14 : vector<8xf32> to vector<8x1xf32>
    %cst_9 = arith.constant 3.125000e-02 : f32
    %16 = vector.broadcast %cst_9 : f32 to vector<8x1xf32>
    %17 = arith.mulf %15, %16 : vector<8x1xf32>
    %18 = vector.broadcast %17 : vector<8x1xf32> to vector<8x128xf32>
    %19 = arith.subf %13, %18 : vector<8x128xf32>
    %20 = tpu.iota {dimensions = array<i32: 1>} : vector<8x128xi32>
    %c32_i32 = arith.constant 32 : i32
    %21 = vector.broadcast %c32_i32 : i32 to vector<8x128xi32>
    %22 = arith.cmpi slt, %20, %21 : vector<8x128xi32>
    %cst_10 = arith.constant 0.000000e+00 : f32
    %23 = vector.broadcast %cst_10 : f32 to vector<8x128xf32>
    %24 = arith.select %22, %19, %23 : vector<8x128xi1>, vector<8x128xf32>
    %25 = arith.mulf %24, %24 : vector<8x128xf32>
    %cst_11 = arith.constant dense<0.000000e+00> : vector<8xf32>
    %26 = vector.multi_reduction <add>, %25, %cst_11 [1] : vector<8x128xf32> to vector<8xf32>
    %27 = vector.shape_cast %26 : vector<8xf32> to vector<8x1xf32>
    %cst_12 = arith.constant 3.125000e-02 : f32
    %28 = vector.broadcast %cst_12 : f32 to vector<8x1xf32>
    %29 = arith.mulf %27, %28 : vector<8x1xf32>
    %cst_13 = arith.constant 9.99999974E-6 : f32
    %30 = vector.broadcast %cst_13 : f32 to vector<8x1xf32>
    %31 = arith.addf %29, %30 : vector<8x1xf32>
    %32 = math.rsqrt %31 : vector<8x1xf32>
    %33 = vector.broadcast %32 : vector<8x1xf32> to vector<8x128xf32>
    %34 = arith.mulf %24, %33 : vector<8x128xf32>
    %c0_14 = arith.constant 0 : index
    %c0_15 = arith.constant 0 : index
    %35 = vector.load %arg4[%c0_14, %c0_15] : memref<1x128xf32, #tpu.memory_space<vmem>>, vector<1x128xf32>
    %36 = vector.broadcast %35 : vector<1x128xf32> to vector<8x128xf32>
    %37 = arith.mulf %34, %36 : vector<8x128xf32>
    %c0_16 = arith.constant 0 : index
    %c0_17 = arith.constant 0 : index
    %38 = vector.load %arg5[%c0_16, %c0_17] : memref<1x128xf32, #tpu.memory_space<vmem>>, vector<1x128xf32>
    %39 = vector.broadcast %38 : vector<1x128xf32> to vector<8x128xf32>
    %40 = arith.addf %37, %39 : vector<8x128xf32>
    %c0_18 = arith.constant 0 : index
    %c0_19 = arith.constant 0 : index
    %41 = vector.load %arg6[%c0_18, %c0_19] : memref<8x128xf32, #tpu.memory_space<vmem>>, vector<8x128xf32>
    tpu.vector_store %arg6[%c0_18, %c0_19], %40 {strides = array<i32>} : memref<8x128xf32, #tpu.memory_space<vmem>>, vector<8x128xf32>,
    return
  }
  func.func @transform_0(%arg0: i32) -> (i32, i32) {
    %c0_i32 = arith.constant 0 : i32
    %c0_i32_0 = arith.constant 0 : i32
    return %arg0, %c0_i32 : i32, i32
  }
  func.func @transform_1(%arg0: i32) -> (i32, i32) {
    %c0_i32 = arith.constant 0 : i32
    %c0_i32_0 = arith.constant 0 : i32
    %c0_i32_1 = arith.constant 0 : i32
    return %c0_i32, %c0_i32_0 : i32, i32
  }
  func.func @transform_2(%arg0: i32) -> (i32, i32) {
    %c0_i32 = arith.constant 0 : i32
    %c0_i32_0 = arith.constant 0 : i32
    %c0_i32_1 = arith.constant 0 : i32
    return %c0_i32, %c0_i32_0 : i32, i32
  }
  func.func @transform_3(%arg0: i32) -> (i32, i32) {
    %c0_i32 = arith.constant 0 : i32
    %c0_i32_0 = arith.constant 0 : i32
    %c0_i32_1 = arith.constant 0 : i32
    return %c0_i32, %c0_i32_0 : i32, i32
  }
  func.func @transform_4(%arg0: i32) -> (i32, i32) {
    %c0_i32 = arith.constant 0 : i32
    %c0_i32_0 = arith.constant 0 : i32
    %c0_i32_1 = arith.constant 0 : i32
    return %c0_i32, %c0_i32_0 : i32, i32
  }
  func.func @transform_5(%arg0: i32) -> (i32, i32) {
    %c0_i32 = arith.constant 0 : i32
    %c0_i32_0 = arith.constant 0 : i32
    return %arg0, %c0_i32 : i32, i32
  }
}

</mosaic_0001>

<bundles_post_ra>
// kernel: tpu_custom_call.1
= control target key start
LH: loop header
LB: loop body
LE: loop exit
PB: predicated region body
PF: predicated region fallthrough
CT: control target
= control target key end

     0   :  { %10 = vsyncpa [#allocation3], 0  ;;  %s899_s0 = inlined_call_operand.hbm [shape: f32[16,32], index: 0, kind: input, shape index: {}]   ;;  %s900_s1 = inlined_call_operand.hbm [shape: f32[32,128], index: 1, kind: input, shape index: {}]   ;;  %s901_s2 = inlined_call_operand.vmem [shape: f32[1,128], index: 2, kind: input, shape index: {}]   ;;  %s902_s3 = inlined_call_operand.vmem [shape: f32[1,128], index: 3, kind: input, shape index: {}]   ;;  %s903_s4 = inlined_call_operand.vmem [shape: f32[1,128], index: 4, kind: input, shape index: {}]   ;;  %s904_s5 = inlined_call_operand.hbm [shape: f32[16,128], index: 5, kind: output, shape index: {}]  }
   0x1   :  { %12 = vsyncpa [#allocation3 + $0x1], 0 }
   0x2   :  { %13 = vsyncpa [#allocation6], 0 }
   0x3   :  { %14 = vsyncpa [#allocation4], 0 }
   0x4   :  { %16 = vsyncpa [#allocation4 + $0x1], 0  ;;  %s732_s18 = smov 0   ;;  %s734_s19 = smov 0  }
   0x5   :  { %s736_s20 = smov 0   ;;  %s738_s21 = smov 0  }
   0x6 LB: > { %s753_s22 = sadd.s32 4294967295, %s693_s21   ;;  %s472_s23 = sadd.s32 4294967294, %s693_s21   ;;  %s693_s21 = sphi %s738_s21, %s926_s21   ;;  %s689_s20 = sphi %s736_s20, %s925_s20   ;;  %s685_s19 = sphi %s734_s19, %s924_s19   ;;  %s681_s18 = sphi %s732_s18, %s923_s18  }
   0x7   : > { %p42_p0 = scmp.ne.s32.totalorder %s685_s19, %s681_s18  ;;  %p905_p1 = scmp.eq.s32.totalorder %s753_s22, 0 }
   0x8   : > { %p156_p3 = scmp.eq.s32.totalorder %s472_s23, 1  ;;  %p473_p5 = scmp.ge.s32.totalorder %s693_s21, 1 }
   0x9   : > { %p762_p4 = por %p905_p1, %p42_p0  ;;  %p163_p7 = scmp.lt.s32.totalorder %s693_s21, 3 }
   0xa   : > { %p767_p6 = por %p156_p3, %p42_p0  ;;  %s695_s27 = smov [#allocation5]  }
   0xb   : > { %s909_s24 = scalar_select %p762_p4, 1, 0 }
   0xc   : > { %s910_s25 = scalar_select %p767_p6, 1, 0 }
   0xd   : > { %p772_p8 = pnand %p473_p5, %p163_p7  ;;  %s175_s28 = sshll.u32 %s695_s27, 4  ;;  %s176_s28 = int_to_ptr.vmem [resolvable:$true] %s175_s28 }
   0xe   : > { %s786_s30 = sadd.s32 1, %s693_s21   ;;  %s29_s6 = sadd.s32 1, %s689_s20 }
   0xf   : > { %s911_s26 = scalar_select %p772_p8, 1, 0 }
  0x10   : > { %p514_p9 = pneg %p772_p8  ;;  %s26_s7 = ssub.s32 %s693_s21, %s786_s30 }
  0x11   : > { %s582_s8 = scalar_lea.vmem %s176_s28, 512  ;;  %p590_p5 = scmp.lt.s32.totalorder %s176_s28, %s176_s28 }
  0x12   : > { %p781_p11 = pnand %p514_p9, %p905_p1  ;;  %p583_p13 = scmp.ne.s32.totalorder %s176_s28, %s582_s8 }
  0x13   : > { %p591_p7 = scmp.lt.s32.totalorder %s582_s8, %s582_s8 }
  0x14   : > { %p573_p12 = pneg %p781_p11 }
  0x15   : > { %p592_p10 = por %p591_p7, %p590_p5 }
  0x16   : > { %p585_p0 = pnand %p583_p13, %p573_p12 }
  0x18   : > { %p586_p3 = pneg %p585_p0 }
  0x1a   : > { %p593_p2 = pnand %p592_p10, %p586_p3 }
  0x1c   : > { %596 = shalt.err (!%p593_p2)
}
  0x1d   : > { %s696_s9 = smov 128   ;;  %s697_s10 = smov 8  }
  0x1e   : > { %517 = dma.hbm_to_vmem [thread:$0]  (!%p781_p11), %s900_s1, 512, %s176_s28, [#allocation6], %s696_s9, %s696_s9, %s697_s10  }
  0x1f   : > { %p27_p9 = scmp.eq.s32.totalorder %s26_s7, 0  ;;  %p36_p12 = scmp.ne.s32.totalorder %s689_s20, %s685_s19 }
  0x20   : > { %p37_p10 = scmp.eq.s32.totalorder %s693_s21, 0  ;;  %p527_p2 = scmp.lt.s32.totalorder %s693_s21, 2 }
  0x21   : > { %s803_s13 = scalar_select %p27_p9, %s689_s20, %s29_s6  }
  0x22   : > { %p38_p13 = por %p37_p10, %p36_p12  ;;  %p913_p0 = scmp.eq.s32.totalorder %s753_s22, 1 }
  0x23   : > { %s198_s15 = sand.u32 1, %s689_s20   ;;  %s477_s16 = sshll.u32 %s693_s21, 7 }
  0x24   : > { %p807_p3 = por %p913_p0, %p36_p12  ;;  %s476_s17 = sshll.u32 %s198_s15, 3 }
  0x25   : > { %s816_s29 = scalar_lea.hbm %s899_s0, %s477_s16  ;;  %s202_s28 = scalar_lea.vmem [#allocation2], %s476_s17 }
  0x26   : > { %s914_s14 = scalar_select %p807_p3, 1, 0 }
  0x27   : > { %s209_s6 = sshll.u32 %s202_s28, 4  ;;  %p818_p11 = pnand %p527_p2, %p38_p13  ;;  %s210_s6 = int_to_ptr.vmem [resolvable:$true] %s209_s6 }
  0x28   : > { %s199_s8 = scalar_lea.sflag [#allocation3], %s198_s15  ;;  %s597_s9 = scalar_lea.hbm %s816_s29, 128 }
  0x29   : > { %p598_p5 = scmp.ne.s32.totalorder %s816_s29, %s597_s9  ;;  %p599_p7 = pneg %p818_p11 }
  0x2a   : > { %s602_s12 = scalar_lea.hbm %s899_s0, 256  ;;  %p603_p10 = scmp.lt.s32.totalorder %s816_s29, %s899_s0 }
  0x2b   : > { %p600_p9 = pnand %p599_p7, %p598_p5  ;;  %p604_p2 = scmp.lt.s32.totalorder %s602_s12, %s597_s9 }
  0x2d   : > { %p601_p12 = pneg %p600_p9  ;;  %p605_p13 = por %p604_p2, %p603_p10 }
  0x2f   : > { %p606_p0 = pnand %p605_p13, %p601_p12 }
  0x31   : > { %609 = shalt.err (!%p606_p0)
}
  0x32   : > { %s610_s23 = scalar_lea.vmem %s210_s6, 128  ;;  %s698_s15 = smov [#allocation2]  }
  0x33   : > { %p611_p1 = scmp.ne.s32.totalorder %s210_s6, %s610_s23  ;;  %s615_s27 = sshll.u32 %s698_s15, 4  ;;  %s616_s27 = int_to_ptr.vmem [resolvable:$false] %s615_s27 }
  0x34   : > { %s617_s28 = scalar_lea.vmem %s616_s27, 256  ;;  %p618_p5 = scmp.lt.s32.totalorder %s210_s6, %s616_s27 }
  0x35   : > { %p613_p6 = pnand %p611_p1, %p599_p7  ;;  %p619_p9 = scmp.lt.s32.totalorder %s617_s28, %s610_s23 }
  0x37   : > { %p614_p3 = pneg %p613_p6  ;;  %p620_p4 = por %p619_p9, %p618_p5 }
  0x39   : > { %p621_p8 = pnand %p620_p4, %p614_p3 }
  0x3b   : > { %624 = shalt.err (!%p621_p8)
}
  0x3c   : > { %521 = dma.hbm_to_vmem [thread:$0]  (!%p818_p11), %s816_s29, 128, %s210_s6, %s199_s8  }
  0x3d   : > { %p916_p12 = scmp.ne.s32.totalorder %s911_s26, 0 }
  0x3e   : > { %s839_s9 = sand.u32 (!%p916_p12), 1, %s685_s19   ;;  %p917_p1 = scmp.ne.s32.totalorder (!%p916_p12), %s909_s24, 0 }
  0x3f   : > { %218 = sbr.rel (%p916_p12) target bundleno = 616 (0x268), region = 40  ;;  %s479_s10 = sshll.u32 (!%p916_p12), %s839_s9, 3 }
  0x40   : > { %s221_s11 = scalar_lea.sflag (!%p916_p12), [#allocation3], %s839_s9  ;;  %s224_s12 = scalar_lea.vmem (!%p916_p12), [#allocation2], %s479_s10 }
  0x44   : > { %668 = dma.done.wait (%p917_p1), %s221_s11, 128  }
  0x45   : > { %670 = vsyncadd (%p917_p1), %s221_s11, 4294967168  ;;  %p918_p4 = scmp.eq.s32.totalorder %s753_s22, 0 }
  0x47   : > { %672 = dma.done.wait (%p918_p4), [#allocation6], 512   ;;  %p919_p6 = pmov %p918_p4 }
  0x48   : > { %v699_v0 = vmov 0.0   ;;  %vm700_vm0 = vmmov 0   ;;  %v259_v1 = vld [vmem:[#allocation5 + $0x18] sm:$0xff]  ;;  %v258_v2 = vld [vmem:[#allocation5 + $0x10] sm:$0xff]  ;;  %v257_v3 = vld [vmem:[#allocation5 + $0x8] sm:$0xff]  ;;  %vm267_vm1 = vcmask 261120   ;;  %v350_v15 = vlaneseq }
  0x49   : > { %674 = vsyncadd (%p919_p6), [#allocation6], 4294966784  ;;  %495 = vmatprep.subr.mxu0 %v699_v0  ;;  %503 = vmatprep.mubr.msk.f32.mxu0 %vm700_vm0, %v699_v0  ;;  %v256_v4 = vld [vmem:[#allocation5] sm:$0xff]  ;;  %v255_v5 = vld [vmem:[%s224_s12] sm:$0xff]  ;;  %s487_s16 = sshll.u32 %s753_s22, 7  ;;  %s254_s17 = scalar_lea.vmem [#allocation7], %s479_s10 }
  0x4a   : > { %496 = vmatpush3.msra.mxu0 %v259_v1  ;;  %v482_v6 = vld [vmem:[%s901_s2] ss:$0 sm:$0xff]  ;;  %v351_v16 = vand.u32 127, %v350_v15  ;;  %s392_s23 = sshll.u32 %s254_s17, 4  ;;  %s390_s28 = scalar_lea.hbm %s904_s5, %s487_s16  ;;  %s393_s23 = int_to_ptr.vmem [resolvable:$true] %s392_s23 }
  0x4b   : > { %497 = vmatprep.subr.mxu0 %v699_v0  ;;  %v484_v26 = vld [vmem:[%s902_s3] ss:$0 sm:$0xff]  ;;  %s379_s11 = scalar_lea.sflag [#allocation4], %s839_s9  ;;  %s625_s12 = scalar_lea.vmem %s393_s23, 128 }
  0x4c   : > { %498 = vmatpush3.msra.mxu0 %v258_v2  ;;  %vm352_vm2 = vcmp.lt.s32.totalorder %v351_v16, 32  ;;  %v485_v28 = vld [vmem:[%s903_s4] ss:$0 sm:$0xff]  ;;  %p626_p8 = scmp.ne.s32.totalorder %s393_s23, %s625_s12  ;;  %p920_p3 = scmp.ne.s32.totalorder %s914_s14, 0 }
  0x4d   : > { %499 = vmatprep.subr.mxu0 %v699_v0  ;;  %s701_s24 = smov [#allocation7]  }
  0x4e   : > { %500 = vmatpush3.msra.mxu0 %v257_v3  ;;  %p627_p11 = pnand %p626_p8, %p920_p3  ;;  %s629_s26 = sshll.u32 %s701_s24, 4  ;;  %s630_s26 = int_to_ptr.vmem [resolvable:$false] %s629_s26 }
  0x4f   : > { %501 = vmatprep.subr.mxu0 %v699_v0  ;;  %s631_s22 = scalar_lea.vmem %s630_s26, 256  ;;  %p632_p10 = scmp.lt.s32.totalorder %s393_s23, %s630_s26 }
  0x50   : > { %502 = vmatpush3.msra.mxu0 %v256_v4  ;;  %p628_p7 = pneg %p627_p11  ;;  %p633_p2 = scmp.lt.s32.totalorder %s631_s22, %s625_s12 }
  0x51   : > { %504 = vmatmul.mubr.msk.f32.vlgmr.msra.gmra.mxu0 %vm267_vm1, %v255_v5 }
  0x52   : > { %p634_p13 = por %p633_p2, %p632_p10 }
  0x54   : > { %p635_p0 = pnand %p634_p13, %p628_p7 }
 0x111   : > { %v337_v7 = vpop.f32.mrf.mxu0 }
 0x112   : > { %v338_v8 = vadd.f32 %v482_v6, %v337_v7 }
 0x113   : > { %v505_v9 = vpop.f32.mrf.mxu0 }
 0x114   : > { %v342_v10 = vmul.f32 0.70710677, %v338_v8  ;;  %v341_v12 = vmul.f32 0.5, %v338_v8 }
 0x116   : > { %567 = verf.f32 %v342_v10 }
 0x123   : > { %v568_v11 = vpop.eup %567 }
 0x124   : > { %v344_v13 = vadd.f32 1.0, %v568_v11 }
 0x126   : > { %v345_v14 = vmul.f32 %v344_v13, %v341_v12 }
 0x128   : > { %346 = vadd.xlane.f32.xlu0 %v345_v14 }
 0x1b1   : > { %v347_v17 = vpop.xlane.xlu0 %346 }
 0x1b2   : > { %v348_v18 = vmul.f32 0.03125, %v347_v17 }
 0x1b4   : > { %v349_v19 = vsub.f32 %v345_v14, %v348_v18 }
 0x1b6   : > { %v353_v20 = vsel %vm352_vm2, %v349_v19, 0.0 }
 0x1b7   : > { %v354_v21 = vmul.f32 %v353_v20, %v353_v20 }
 0x1b9   : > { %355 = vadd.xlane.f32.xlu0 %v354_v21 }
 0x242   : > { %v356_v22 = vpop.xlane.xlu0 %355 }
 0x243   : > { %v357_v23 = vmul.f32 0.03125, %v356_v22 }
 0x245   : > { %v358_v24 = vadd.f32 1e-05, %v357_v23 }
 0x247   : > { %569 = vrsqrt.f32 %v358_v24 }
 0x254   : > { %v570_v25 = vpop.eup %569 }
 0x255   : > { %v360_v27 = vmul.f32 %v570_v25, %v353_v20 }
 0x257   : > { %v368_v29 = vmul.f32 %v484_v26, %v360_v27 }
 0x259   : > { %v376_v30 = vadd.f32 %v485_v28, %v368_v29 }
 0x25b   : > { %377 = vst [vmem:[%s254_s17] sm:$0xff] %v376_v30 }
 0x25c   : > { %638 = shalt.err (!%p635_p0)
}
 0x25d   : > { %s639_s10 = scalar_lea.hbm %s390_s28, 128  ;;  %s643_s6 = scalar_lea.hbm %s904_s5, 256 }
 0x25e   : > { %p640_p5 = scmp.ne.s32.totalorder %s390_s28, %s639_s10  ;;  %p644_p1 = scmp.lt.s32.totalorder %s390_s28, %s904_s5 }
 0x25f   : > { %p645_p4 = scmp.lt.s32.totalorder %s643_s6, %s639_s10 }
 0x260   : > { %p641_p9 = pnand %p640_p5, %p920_p3 }
 0x261   : > { %p646_p6 = por %p645_p4, %p644_p1 }
 0x262   : > { %p642_p12 = pneg %p641_p9 }
 0x264   : > { %p647_p8 = pnand %p646_p6, %p642_p12 }
 0x266   : > { %650 = shalt.err (!%p647_p8)
}
 0x267   : > { %512 = dma.vmem_to_hbm [thread:$0]  (%p920_p3), %s393_s23, 128, %s390_s28, %s379_s11  }
 0x268 PF: > { %s404_s16 = sand.u32 1, %s681_s18   ;;  %p921_p11 = scmp.ne.s32.totalorder %s910_s25, 0 }
 0x269   : > { %p922_p7 = scmp.ge.s32.totalorder %s693_s21, 2  ;;  %s405_s17 = scalar_lea.sflag [#allocation4], %s404_s16 }
 0x26b   : > { %p523_p10 = pnand %p922_p7, %p921_p11 }
 0x26d   : > { %p524_p2 = pneg %p523_p10 }
 0x26f   : > { %676 = dma.done.wait (%p524_p2), %s405_s17, 128  }
 0x270   : > { %678 = vsyncadd (%p524_p2), %s405_s17, 4294967168  ;;  %p19_p13 = scmp.ge.s32.totalorder %s786_s30, 4   ;;  %s923_s18 = smov %s685_s19 }
 0x271   : > { %s924_s19 = smov %s689_s20  ;;  %s925_s20 = smov %s803_s13 }
 0x272   : > { %s926_s21 = smov %s786_s30  ;;  %21 = sbr.rel (!%p19_p13) target bundleno = 6 (0x6), region = 89 }
 0x277   :  { %410 = vsyncpa [#allocation3], 1 }
 0x278   :  { %412 = vsyncpa [#allocation3 + $0x1], 1 }
 0x279   :  { %413 = vsyncpa [#allocation6], 1 }
 0x27a   :  { %414 = vsyncpa [#allocation4], 1 }
 0x27b   :  { %416 = vsyncpa [#allocation4 + $0x1], 1 }

</bundles_post_ra>
